<compile_context>
chip_gen: v7x
topology: tpu7x:2x2x1
jax: 0.10.0
libtpu: 0.0.40
codegen_flags: <defaults>
</compile_context>

<pallas_src>
import functools

import jax
import jax.numpy as jnp
from jax import lax
from jax.experimental import pallas as pl
from jax.experimental.pallas import tpu as pltpu


def _cdiv(a, b):
    return -(-a // b)


def _round_up(a, b):
    return _cdiv(a, b) * b


def _instance_norm_kernel(x_ref, o_ref, *, eps, inv_hw, valid_hw, masked):
    # x_ref / o_ref: (TILE_ROWS, HW_PAD) lane-dense tile; one row = one (n, c) instance.
    x = x_ref[...].astype(jnp.float32)
    # Shifted two-pass stats: the tile is already resident in VMEM, so the
    # second pass is a free VMEM re-read and matches the PyTorch reference
    # more robustly than sum/sumsq (no catastrophic cancellation).
    mean = jnp.sum(x, axis=-1, keepdims=True) * inv_hw      # padded lanes are 0
    xc = x - mean
    if masked:
        # Lane axis was zero-padded to a multiple of 128: padded columns add 0
        # to the mean but (0 - mean)^2 to the centered sum, so mask them here.
        lane = lax.broadcasted_iota(jnp.int32, x.shape, dimension=x.ndim - 1)
        xc_v = jnp.where(lane < valid_hw, xc, 0.0)
    else:
        xc_v = xc
    var = jnp.sum(xc_v * xc_v, axis=-1, keepdims=True) * inv_hw
    # PyTorch semantics: (x - mean) / (std + eps), unbiased=False.
    # approx=True would push this onto the EUP, but one divide per H*W elements
    # is negligible for an HBM-bound kernel; keep full precision.
    inv_std = pl.reciprocal(jnp.sqrt(var) + eps, approx=False)
    o_ref[...] = (xc * inv_std).astype(o_ref.dtype)


def _vmem_capacity_bytes():
    try:
        return int(pltpu.get_tpu_info().vmem_capacity_bytes)
    except Exception:
        return 64 * 1024 * 1024          # conservative fallback: v7x per-TC VMEM


def _choose_tile_rows(rows, sublane, rows_cap):
    """Sublane-aligned row tile; prefer >=2 (ideally even) grid steps for v7x."""
    if rows <= sublane:
        return rows                                   # single block == full dim
    aligned_max = (rows // sublane) * sublane         # largest aligned tile <= rows
    tile = max(sublane, min(rows_cap, aligned_max))
    n = _cdiv(rows, tile)
    if n < 2:
        # v7x has 2 TensorCores sharing chip HBM bandwidth: give each a block.
        tile = min(aligned_max, max(sublane, _round_up(_cdiv(rows, 2), sublane)))
        n = _cdiv(rows, tile)
    if n > 1 and n % 2 == 1:
        cand = min(aligned_max, max(sublane, _round_up(_cdiv(rows, n + 1), sublane)))
        if _cdiv(rows, cand) % 2 == 0:
            tile = cand
    return tile


def custom_instance_norm(x, epsilon=1e-5):
    N, C, H, W = x.shape
    rows, hw = N * C, H * W
    itemsize = jnp.dtype(x.dtype).itemsize
    sublane = max(8, 32 // itemsize)                  # f32: 8, bf16: 16, int8/fp8: 32

    # Lane-dense packing: H*W on the lane axis.
    x2 = x.reshape(rows, hw)
    hw_pad = _round_up(hw, 128)
    masked = hw_pad != hw
    if masked:
        # Pad lanes to a 128 multiple so stores are full-width (no vst.msk);
        # the kernel masks the padding out of the variance.
        x2 = jnp.pad(x2, ((0, 0), (0, hw_pad - hw)))

    # ---- generation-aware tile sizing --------------------------------------
    vmem_cap = _vmem_capacity_bytes()                 # 128 MiB v5e/v6e, 64 MiB v7x
    vmem_limit = min(vmem_cap * 3 // 4, 112 * 1024 * 1024)
    bytes_per_row = hw_pad * itemsize
    # Double-buffered input + output => 4 live tiles; keep them <= half the
    # scoped limit so Mosaic has headroom for internal scratch.
    max_tile_bytes = vmem_limit // 8
    if sublane * bytes_per_row > max_tile_bytes:
        # Huge spatial planes: raise the scoped limit so at least one minimal
        # sublane-aligned row tile (double-buffered in+out) still fits.
        vmem_limit = min(vmem_cap, 4 * sublane * bytes_per_row + (8 << 20))
        max_tile_bytes = sublane * bytes_per_row
        # TODO(synk): for planes too large for even one minimal row tile in
        # physical VMEM, add an hw-tiled two-phase grid (partial-sum scratch +
        # normalize pass) instead of a single row tile.
    rows_cap = max(sublane, (max_tile_bytes // bytes_per_row) // sublane * sublane)
    tile_rows = _choose_tile_rows(rows, sublane, rows_cap)
    # No row padding: ragged last block's OOB rows are computed then dropped by
    # masked writes (rows are independent), so no extra HBM pass.
    grid = (_cdiv(rows, tile_rows),)

    kernel = functools.partial(
        _instance_norm_kernel,
        eps=float(epsilon),
        inv_hw=1.0 / float(hw),
        valid_hw=hw,
        masked=masked,
    )

    out2 = pl.pallas_call(
        kernel,
        out_shape=jax.ShapeDtypeStruct((rows, hw_pad), x.dtype),
        grid_spec=pltpu.PrefetchScalarGridSpec(
            num_scalar_prefetch=0,
            grid=grid,
            in_specs=[pl.BlockSpec((tile_rows, hw_pad), lambda i: (i, 0))],
            out_specs=pl.BlockSpec((tile_rows, hw_pad), lambda i: (i, 0)),
        ),
        compiler_params=pltpu.CompilerParams(
            dimension_semantics=("parallel",),
            vmem_limit_bytes=int(vmem_limit),
        ),
        cost_estimate=pl.CostEstimate(
            flops=6 * rows * hw_pad,                  # sum, sub, sq, sum, mul, ...
            transcendentals=2 * rows,                 # sqrt + reciprocal per instance
            bytes_accessed=2 * rows * hw_pad * itemsize,
        ),
    )(x2)

    if masked:
        out2 = out2[:, :hw]
    return out2.reshape(N, C, H, W)


def _reference(x, epsilon=1e-5):
    mean = jnp.mean(x, axis=(2, 3), keepdims=True)
    std = jnp.sqrt(jnp.mean((x - mean) ** 2, axis=(2, 3), keepdims=True))
    return (x - mean) / (std + epsilon)


if __name__ == "__main__":
    k0, k1, k2 = jax.random.split(jax.random.PRNGKey(0), 3)

    # Primary shape implied by the module spec.
    x = jax.random.normal(k0, (2, 4, 16, 16), dtype=jnp.float32)
    out = custom_instance_norm(x)
    jax.block_until_ready(out)
    assert out.shape == x.shape and out.dtype == x.dtype
    assert jnp.allclose(out, _reference(x), atol=1e-5, rtol=1e-5)

    # Non-128-multiple spatial plane: exercises lane padding + masked variance.
    x_odd = jax.random.normal(k1, (2, 3, 7, 9), dtype=jnp.float32)
    out_odd = custom_instance_norm(x_odd)
    jax.block_until_ready(out_odd)
    assert jnp.allclose(out_odd, _reference(x_odd), atol=1e-5, rtol=1e-5)

    # Row count not a multiple of the tile: exercises the ragged last block.
    x_rag = jax.random.normal(k2, (5, 4, 16, 16), dtype=jnp.float32)
    out_rag = custom_instance_norm(x_rag)
    jax.block_until_ready(out_rag)
    assert jnp.allclose(out_rag, _reference(x_rag), atol=1e-5, rtol=1e-5)

    print("KERNEL_OK")
</pallas_src>

<mosaic_0001>
module attributes {stable_mosaic.version = 11 : i64} {
  func.func @_instance_norm_kernel(%arg0: i32, %arg1: memref<8x256xf32, #tpu.memory_space<vmem>>, %arg2: memref<8x256xf32, #tpu.memory_space<vmem>>) attributes {dimension_semantics = [#tpu.dimension_semantics<parallel>], iteration_bounds = array<i64: 1>, scalar_prefetch = 0 : i64, scratch_operands = 0 : i64, tpu.core_type = #tpu.core_type<tc>, window_params = [{transform_indices = @transform_0, window_bounds = array<i64: 8, 256>}, {transform_indices = @transform_1, window_bounds = array<i64: 8, 256>}]} {
    %c0 = arith.constant 0 : index
    %c0_0 = arith.constant 0 : index
    %0 = vector.load %arg1[%c0, %c0_0] : memref<8x256xf32, #tpu.memory_space<vmem>>, vector<8x256xf32>
    %cst = arith.constant dense<0.000000e+00> : vector<8xf32>
    %1 = vector.multi_reduction <add>, %0, %cst [1] : vector<8x256xf32> to vector<8xf32>
    %2 = vector.shape_cast %1 : vector<8xf32> to vector<8x1xf32>
    %cst_1 = arith.constant 3.906250e-03 : f32
    %3 = vector.broadcast %cst_1 : f32 to vector<8x1xf32>
    %4 = arith.mulf %2, %3 : vector<8x1xf32>
    %5 = vector.broadcast %4 : vector<8x1xf32> to vector<8x256xf32>
    %6 = arith.subf %0, %5 : vector<8x256xf32>
    %7 = arith.mulf %6, %6 : vector<8x256xf32>
    %cst_2 = arith.constant dense<0.000000e+00> : vector<8xf32>
    %8 = vector.multi_reduction <add>, %7, %cst_2 [1] : vector<8x256xf32> to vector<8xf32>
    %9 = vector.shape_cast %8 : vector<8xf32> to vector<8x1xf32>
    %cst_3 = arith.constant 3.906250e-03 : f32
    %10 = vector.broadcast %cst_3 : f32 to vector<8x1xf32>
    %11 = arith.mulf %9, %10 : vector<8x1xf32>
    %12 = math.sqrt %11 : vector<8x1xf32>
    %cst_4 = arith.constant 9.99999974E-6 : f32
    %13 = vector.broadcast %cst_4 : f32 to vector<8x1xf32>
    %14 = arith.addf %12, %13 : vector<8x1xf32>
    %15 = tpu.reciprocal %14 : vector<8x1xf32> -> vector<8x1xf32>
    %16 = vector.broadcast %15 : vector<8x1xf32> to vector<8x256xf32>
    %17 = arith.mulf %6, %16 : vector<8x256xf32>
    %c0_5 = arith.constant 0 : index
    %c0_6 = arith.constant 0 : index
    %18 = vector.load %arg2[%c0_5, %c0_6] : memref<8x256xf32, #tpu.memory_space<vmem>>, vector<8x256xf32>
    tpu.vector_store %arg2[%c0_5, %c0_6], %17 {strides = array<i32>} : memref<8x256xf32, #tpu.memory_space<vmem>>, vector<8x256xf32>,
    return
  }
  func.func @transform_0(%arg0: i32) -> (i32, i32) {
    %c0_i32 = arith.constant 0 : i32
    %c0_i32_0 = arith.constant 0 : i32
    return %arg0, %c0_i32 : i32, i32
  }
  func.func @transform_1(%arg0: i32) -> (i32, i32) {
    %c0_i32 = arith.constant 0 : i32
    %c0_i32_0 = arith.constant 0 : i32
    return %arg0, %c0_i32 : i32, i32
  }
}

</mosaic_0001>

<bundles_post_ra>
// kernel: tpu_custom_call.1
= control target key start
LH: loop header
LB: loop body
LE: loop exit
PB: predicated region body
PF: predicated region fallthrough
CT: control target
= control target key end

     0   :  { %6 = vsyncpa [#allocation3], 0  ;;  %s153_s0 = inlined_call_operand.hbm [shape: f32[8,256], index: 0, kind: input, shape index: {}]   ;;  %s154_s1 = inlined_call_operand.hbm [shape: f32[8,256], index: 1, kind: output, shape index: {}]  }
   0x1   :  { %7 = vsyncpa [#allocation4], 0  ;;  %s117_s6 = smov [#allocation2]   ;;  %s69_s10 = scalar_lea.hbm %s153_s0, 256 }
   0x2   :  { %s14_s7 = sshll.u32 %s117_s6, 4  ;;  %p70_p0 = scmp.ne.s32.totalorder %s153_s0, %s69_s10  ;;  %s15_s7 = int_to_ptr.vmem [resolvable:$true] %s14_s7 }
   0x3   :  { %p73_p1 = scmp.lt.u32.totalorder %s69_s10, %s153_s0 }
   0x5   :  { %p75_p2 = pnand %p73_p1, %p70_p0 }
   0x7   :  { %78 = shalt.err (!%p75_p2)
}
   0x8   :  { %s79_s15 = scalar_lea.vmem %s15_s7, 256  ;;  %p84_p4 = scmp.lt.s32.totalorder %s15_s7, %s15_s7 }
   0x9   :  { %p80_p3 = scmp.ne.s32.totalorder %s15_s7, %s79_s15  ;;  %p85_p5 = scmp.lt.s32.totalorder %s79_s15, %s79_s15 }
   0xb   :  { %p86_p6 = por %p85_p5, %p84_p4 }
   0xd   :  { %p87_p7 = pnand %p86_p6, %p80_p3 }
   0xf   :  { %90 = shalt.err (!%p87_p7)
}
  0x10   :  { %17 = dma.hbm_to_vmem [thread:$0]  %s153_s0, 256, %s15_s7, [#allocation3]  }
  0x11   :  { %113 = dma.done.wait [#allocation3], 256  }
  0x12   :  { %114 = vsyncadd [#allocation3], 4294967040  ;;  %v21_v0 = vld [vmem:[#allocation2] sm:$0xff]  ;;  %v22_v1 = vld [vmem:[#allocation2 + $0x8] sm:$0xff]  ;;  %s118_s0 = smov [#allocation5]  }
  0x13   :  { %v23_v2 = vadd.f32 %v22_v1, %v21_v0  ;;  %s54_s18 = sshll.u32 %s118_s0, 4  ;;  %s55_s18 = int_to_ptr.vmem [resolvable:$true] %s54_s18 }
  0x14   :  { %s91_s19 = scalar_lea.vmem %s55_s18, 256  ;;  %p96_p9 = scmp.lt.s32.totalorder %s55_s18, %s55_s18 }
  0x15   :  { %24 = vadd.xlane.f32.xlu0 %v23_v2  ;;  %p92_p8 = scmp.ne.s32.totalorder %s55_s18, %s91_s19  ;;  %p97_p10 = scmp.lt.s32.totalorder %s91_s19, %s91_s19 }
  0x17   :  { %p98_p11 = por %p97_p10, %p96_p9 }
  0x19   :  { %p99_p12 = pnand %p98_p11, %p92_p8 }
  0xa2   :  { %v25_v3 = vpop.xlane.xlu0 %24 }
  0xa3   :  { %v26_v4 = vmul.f32 0.00390625, %v25_v3 }
  0xa5   :  { %v27_v5 = vsub.f32 %v21_v0, %v26_v4  ;;  %v28_v6 = vsub.f32 %v22_v1, %v26_v4 }
  0xa7   :  { %v29_v7 = vmul.f32 %v27_v5, %v27_v5  ;;  %v30_v8 = vmul.f32 %v28_v6, %v28_v6 }
  0xa9   :  { %v31_v9 = vadd.f32 %v30_v8, %v29_v7 }
  0xab   :  { %32 = vadd.xlane.f32.xlu0 %v31_v9 }
 0x138   :  { %v33_v10 = vpop.xlane.xlu0 %32 }
 0x139   :  { %v34_v11 = vmul.f32 0.00390625, %v33_v10 }
 0x13b   :  { %65 = vrsqrt.f32 %v34_v11  ;;  %vm37_vm0 = vcmp.eq.f32.partialorder %v34_v11, inf  ;;  %v40_v14 = vand.u32 2147483648, %v34_v11  ;;  %vm39_vm1 = vcmp.eq.f32.partialorder %v34_v11, 0.0 }
 0x145   :  { %v66_v12 = vpop.eup %65 }
 0x146   :  { %v36_v13 = vmul.f32 %v66_v12, %v34_v11 }
 0x148   :  { %v38_v15 = vsel %vm37_vm0, %v34_v11, %v36_v13 }
 0x149   :  { %v41_v16 = vsel %vm39_vm1, %v40_v14, %v38_v15 }
 0x14a   :  { %v42_v17 = vadd.f32 1e-05, %v41_v16 }
 0x14c   :  { %67 = vrcp.f32 %v42_v17 }
 0x156   :  { %v68_v18 = vpop.eup %67 }
 0x157   :  { %v44_v19 = vmul.f32 %v68_v18, %v27_v5  ;;  %v45_v20 = vmul.f32 %v68_v18, %v28_v6 }
 0x159   :  { %46 = vst [vmem:[#allocation5] sm:$0xff] %v44_v19  ;;  %47 = vst [vmem:[#allocation5 + $0x8] sm:$0xff] %v45_v20 }
 0x15a   :  { %102 = shalt.err (!%p99_p12)
}
 0x15b   :  { %s103_s22 = scalar_lea.hbm %s154_s1, 256 }
 0x15c   :  { %p104_p13 = scmp.ne.s32.totalorder %s154_s1, %s103_s22  ;;  %p107_p0 = scmp.lt.u32.totalorder %s103_s22, %s154_s1 }
 0x15e   :  { %p109_p1 = pnand %p107_p0, %p104_p13 }
 0x160   :  { %112 = shalt.err (!%p109_p1)
}
 0x161   :  { %57 = dma.vmem_to_hbm [thread:$0]  %s55_s18, 256, %s154_s1, [#allocation4]  }
 0x162   :  { %115 = dma.done.wait [#allocation4], 256  }
 0x163   :  { %116 = vsyncadd [#allocation4], 4294967040 }
 0x164   :  { %61 = vsyncpa [#allocation3], 1 }
 0x165   :  { %62 = vsyncpa [#allocation4], 1 }

</bundles_post_ra>
